<compile_context>
chip_gen: v6e
topology: v6e:2x2x1
jax: 0.10.0
libtpu: 0.0.40
codegen_flags: <defaults>
</compile_context>

<pallas_src>
import functools

import jax
import jax.numpy as jnp
from jax import lax
from jax.experimental import pallas as pl
from jax.experimental.pallas import tpu as pltpu

EPS = 1e-5          # torch.nn.LayerNorm default eps
_NEG_INF = -1e30    # finite "minus infinity" (avoids inf-inf NaN edge cases)


# ----------------------------- in-kernel helpers -----------------------------

def _layernorm(v, g, b):
    mu = jnp.mean(v, axis=-1, keepdims=True)
    c = v - mu
    var = jnp.mean(c * c, axis=-1, keepdims=True)
    return c * lax.rsqrt(var + EPS) * g + b


def _gelu_erf(x):
    """erf-based GELU matching nn.GELU() default.

    erf via the Abramowitz & Stegun 7.1.26 rational; the divide uses the EUP
    approximate reciprocal, so the overall accuracy is ~1e-3 relative (plenty for
    a block whose matmuls already run in bf16).  exp and the reciprocal both land
    on the EUP, keeping the VALU slot free.
    """
    a1, a2, a3, a4, a5 = 0.254829592, -0.284496736, 1.421413741, -1.453152027, 1.061405429
    p = 0.3275911
    u = x * (2.0 ** -0.5)
    s = jnp.sign(u)
    au = jnp.abs(u)
    t = pl.reciprocal(1.0 + p * au, approx=True)
    poly = ((((a5 * t + a4) * t + a3) * t + a2) * t + a1) * t
    erf = s * (1.0 - poly * jnp.exp(-au * au))
    return 0.5 * x * (1.0 + erf)


# --------------------------- kernel 1: LN + QKV -------------------------------

def _ln_qkv_kernel(x_ref, g_ref, b_ref, wqT_ref, bq_ref, wkT_ref, wvT_ref, bv_ref,
                   q_ref, k_ref, v_ref):
    # x_ref: (1, tt, D) f32.  q/k/v_ref: (1, H, tt, dh) bf16 (head-major).
    x = x_ref[0]
    n_head, dh = q_ref.shape[1], q_ref.shape[3]

    def split_heads(y):
        # (tt, D) -> (H, tt, dh): one relayout + one full-width store at the call
        # site instead of 3*H masked sub-128-lane stores.
        return jnp.transpose(y.reshape(y.shape[0], n_head, dh), (1, 0, 2))

    ln1 = _layernorm(x, g_ref[...], b_ref[...])            # f32 on the VPU
    a = ln1.astype(jnp.bfloat16)                           # bf16 MXU operands
    q = jnp.dot(a, wqT_ref[...], preferred_element_type=jnp.float32) + bq_ref[...]
    k = jnp.dot(a, wkT_ref[...], preferred_element_type=jnp.float32)
    v = jnp.dot(a, wvT_ref[...], preferred_element_type=jnp.float32) + bv_ref[...]
    q_ref[0] = split_heads(q.astype(jnp.bfloat16))
    k_ref[0] = split_heads(k.astype(jnp.bfloat16))
    v_ref[0] = split_heads(v.astype(jnp.bfloat16))


# ------------- kernel 2: flash attention + out-proj + MLP ---------------------

def _attn_mlp_kernel(tkv, seq_len, x_ref, q_ref, k_ref, v_ref, woT_ref, bo_ref,
                     ln2_g_ref, ln2_b_ref, w1T_ref, b1_ref, w2T_ref, b2_ref, o_ref):
    x = x_ref[0]                                    # (tq, D) f32 residual stream
    qh = q_ref[0]                                   # (H, tq, dh) bf16 (scale folded in)
    n_head, tq, dh = qh.shape

    def kv_step(start, carry, kmask=None):
        m, l, acc = carry
        kb = k_ref[0, :, pl.ds(start, tkv), :]      # (H, tkv, dh) bf16
        vb = v_ref[0, :, pl.ds(start, tkv), :]
        s = lax.dot_general(qh, kb, (((2,), (2,)), ((0,), (0,))),
                            preferred_element_type=jnp.float32)      # (H, tq, tkv)
        if kmask is not None:                       # static: only the partial tail tile
            s = jnp.where(kmask, s, _NEG_INF)
        m_new = jnp.maximum(m, jnp.max(s, axis=-1, keepdims=True))
        alpha = jnp.exp(m - m_new)                  # f32, tiny (H, tq, 1)
        # bf16 exp: the inner loop is EUP-bound; bf16 EUP (v6e/v7x) doubles exp
        # throughput and p feeds a bf16 MXU matmul anyway (neutral on v5e).
        p = jnp.exp((s - m_new).astype(jnp.bfloat16))
        l_new = alpha * l + jnp.sum(p.astype(jnp.float32), axis=-1, keepdims=True)
        pv = lax.dot_general(p, vb, (((2,), (1,)), ((0,), (0,))),
                             preferred_element_type=jnp.float32)     # (H, tq, dh)
        return m_new, l_new, alpha * acc + pv

    m0 = jnp.full((n_head, tq, 1), _NEG_INF, jnp.float32)
    l0 = jnp.zeros((n_head, tq, 1), jnp.float32)
    a0 = jnp.zeros((n_head, tq, dh), jnp.float32)
    carry = (m0, l0, a0)

    n_full = seq_len // tkv            # kv tiles containing only real keys
    rem = seq_len - n_full * tkv       # real keys inside the single partial tile
    if n_full > 0:
        carry = lax.fori_loop(
            0, n_full,
            lambda i, c: kv_step(pl.multiple_of(i * tkv, tkv), c),
            carry)
    if rem > 0:                        # mask padded keys; fully-padded tiles skipped
        kmask = lax.broadcasted_iota(jnp.int32, (1, 1, tkv), 2) < rem
        carry = kv_step(n_full * tkv, carry, kmask)
    _, l, acc = carry

    # Softmax normalize on the EUP, then ONE deep-K output projection:
    # relayout (H,tq,dh) -> (tq,D) once and run (tq,D)x(D,D) on the MXU.
    wv = (acc * pl.reciprocal(l, approx=True)).astype(jnp.bfloat16)
    wv_td = jnp.transpose(wv, (1, 0, 2)).reshape(tq, n_head * dh)
    attn = jnp.dot(wv_td, woT_ref[...], preferred_element_type=jnp.float32) + bo_ref[...]
    x1 = x + attn                                   # residual in f32

    ln2 = _layernorm(x1, ln2_g_ref[...], ln2_b_ref[...])
    hdn = jnp.dot(ln2.astype(jnp.bfloat16), w1T_ref[...],
                  preferred_element_type=jnp.float32) + b1_ref[...]  # (tq, 4D)
    hdn = _gelu_erf(hdn)
    mlp = jnp.dot(hdn.astype(jnp.bfloat16), w2T_ref[...],
                  preferred_element_type=jnp.float32) + b2_ref[...]
    o_ref[0] = (x1 + mlp).astype(o_ref.dtype)


# -------------------------------- wrapper --------------------------------------

def _round_up(n, m):
    return (n + m - 1) // m * m


def _choose_tiles(T, tq, tkv):
    # T-axis tiles must be multiples of 16 (bf16 sublane packing of the (B,H,T,dh)
    # q/k/v intermediates) and tkv must divide tq so it also divides padded T.
    t_cap = _round_up(T, 16)
    tq = max(16, min(_round_up(tq, 16), t_cap))
    tkv = max(16, min(_round_up(tkv, 16), tq))
    while tq % tkv:
        tkv -= 16
    return tq, tkv


def _default_vmem_limit():
    # Use most of physical VMEM (128 MiB v5e/v6e, 64 MiB per core on v7x), with
    # headroom for Mosaic's internal scratch.
    try:
        return int(pltpu.get_tpu_info().vmem_capacity_bytes) * 7 // 8
    except Exception:
        return 64 * 1024 * 1024


def _resident(shape):
    # Grid-invariant operand: constant block index => whole array resident in VMEM,
    # single-buffered (double-buffering an invariant block is pure VMEM waste).
    index_map = lambda *_: (0,) * len(shape)
    try:
        return pl.BlockSpec(shape, index_map, pipeline_mode=pl.Buffered(1))
    except Exception:  # older toolchains without pipeline_mode / Buffered
        return pl.BlockSpec(shape, index_map)


def residual_attention_block(x, params, n_head, *, tq=256, tkv=256,
                             vmem_limit_bytes=None):
    """x: (B, T, D) float32. params: PyTorch-layout (out, in) weights, see __main__."""
    (ln1_g, ln1_b, wq, bq, wk, wv, bv, wo, bo,
     ln2_g, ln2_b, w1, b1, w2, b2) = params
    B, T, D = x.shape
    assert D % n_head == 0
    dh = D // n_head
    n_mlp = 4 * D

    f32, bf16 = jnp.float32, jnp.bfloat16
    tq, tkv = _choose_tiles(T, tq, tkv)
    T_pad = _round_up(T, tq)
    x_in = x if T_pad == T else jnp.pad(x, ((0, 0), (0, T_pad - T), (0, 0)))

    scale = float(dh) ** -0.5   # reference applies dh**-0.25 to both q and k
    # Host-side weight prep (layout plumbing, done once): fold the attention scale
    # into Wq/bq, transpose to (in, out) so in-kernel contractions are (T,K)x(K,N),
    # cast all MXU operands to bf16.
    wqT = (wq * scale).T.astype(bf16)
    bq_s = (bq * scale).astype(f32)
    wkT = wk.T.astype(bf16)
    wvT = wv.T.astype(bf16)
    woT = wo.T.astype(bf16)
    w1T = w1.T.astype(bf16)
    w2T = w2.T.astype(bf16)

    if vmem_limit_bytes is None:
        vmem_limit_bytes = _default_vmem_limit()
    cparams = pltpu.CompilerParams(
        dimension_semantics=("parallel", "parallel"),
        vmem_limit_bytes=vmem_limit_bytes)

    # ---- kernel 1: LayerNorm + QKV projection -> head-major bf16 q/k/v ----
    ce1 = pl.CostEstimate(
        flops=int(6 * B * T_pad * D * D + 10 * B * T_pad * D),
        transcendentals=int(B * T_pad),
        bytes_accessed=int(B * T_pad * D * 4 + (3 * D * D + 3 * D) * 2
                           + 3 * B * T_pad * D * 2))
    qkv_shape = jax.ShapeDtypeStruct((B, n_head, T_pad, dh), bf16)
    q, k, v = pl.pallas_call(
        _ln_qkv_kernel,
        out_shape=(qkv_shape, qkv_shape, qkv_shape),
        grid_spec=pltpu.PrefetchScalarGridSpec(
            num_scalar_prefetch=0,
            grid=(B, T_pad // tq),
            in_specs=[
                pl.BlockSpec((1, tq, D), lambda b, i: (b, i, 0)),   # x tile
                _resident((1, D)), _resident((1, D)),               # attn_ln gamma, beta
                _resident((D, D)), _resident((1, D)),               # Wq^T (scaled), bq
                _resident((D, D)),                                  # Wk^T (no bias)
                _resident((D, D)), _resident((1, D)),               # Wv^T, bv
            ],
            out_specs=(pl.BlockSpec((1, n_head, tq, dh),
                                    lambda b, i: (b, 0, i, 0)),) * 3,
        ),
        compiler_params=cparams,
        cost_estimate=ce1,
    )(x_in, ln1_g, ln1_b, wqT, bq_s, wkT, wvT, bv)

    # ---- kernel 2: flash attention + out-proj + residual + LN + MLP + residual ----
    ce2 = pl.CostEstimate(
        flops=int(B * (4 * T_pad * T_pad * D + 18 * T_pad * D * D + 40 * T_pad * D)),
        transcendentals=int(B * (n_head * T_pad * T_pad + 3 * T_pad * n_mlp)),
        bytes_accessed=int(2 * B * T_pad * D * 4 + 3 * B * T_pad * D * 2
                           + (9 * D * D + 6 * D) * 2))
    out = pl.pallas_call(
        functools.partial(_attn_mlp_kernel, tkv, T),
        out_shape=jax.ShapeDtypeStruct((B, T_pad, D), x.dtype),
        grid_spec=pltpu.PrefetchScalarGridSpec(
            num_scalar_prefetch=0,
            grid=(B, T_pad // tq),
            in_specs=[
                pl.BlockSpec((1, tq, D), lambda b, i: (b, i, 0)),               # x tile
                pl.BlockSpec((1, n_head, tq, dh), lambda b, i: (b, 0, i, 0)),   # q tile
                pl.BlockSpec((1, n_head, T_pad, dh), lambda b, i: (b, 0, 0, 0)),  # K
                pl.BlockSpec((1, n_head, T_pad, dh), lambda b, i: (b, 0, 0, 0)),  # V
                _resident((D, D)), _resident((1, D)),                           # Wo^T, bo
                _resident((1, D)), _resident((1, D)),                           # mlp_ln
                _resident((D, n_mlp)), _resident((1, n_mlp)),                   # W1^T, b1
                _resident((n_mlp, D)), _resident((1, D)),                       # W2^T, b2
            ],
            out_specs=pl.BlockSpec((1, tq, D), lambda b, i: (b, i, 0)),
        ),
        compiler_params=cparams,
        cost_estimate=ce2,
    )(x_in, q, k, v, woT, bo, ln2_g, ln2_b, w1T, b1, w2T, b2)
    return out if T_pad == T else out[:, :T, :]


# ------------------------- pure-JAX reference (for check) ---------------------

def reference(x, params, n_head):
    (ln1_g, ln1_b, wq, bq, wk, wv, bv, wo, bo,
     ln2_g, ln2_b, w1, b1, w2, b2) = params
    HI = jax.lax.Precision.HIGHEST

    def ln(v, g, b):
        mu = v.mean(-1, keepdims=True)
        var = ((v - mu) ** 2).mean(-1, keepdims=True)
        return (v - mu) / jnp.sqrt(var + EPS) * g + b

    def lin(v, w, b=None):
        y = jnp.einsum('btd,od->bto', v, w, precision=HI)
        return y if b is None else y + b

    B, T, D = x.shape
    dh = D // n_head
    scale = float(dh) ** -0.25

    l1 = ln(x, ln1_g, ln1_b)
    q = lin(l1, wq, bq).reshape(B, T, n_head, dh).transpose(0, 2, 1, 3) * scale
    k = lin(l1, wk).reshape(B, T, n_head, dh).transpose(0, 2, 3, 1) * scale
    v = lin(l1, wv, bv).reshape(B, T, n_head, dh).transpose(0, 2, 1, 3)
    qk = jnp.einsum('bhqd,bhdk->bhqk', q, k, precision=HI)
    w = jax.nn.softmax(qk, axis=-1)
    wvv = jnp.einsum('bhqk,bhkd->bhqd', w, v, precision=HI)
    wvv = wvv.transpose(0, 2, 1, 3).reshape(B, T, D)
    x1 = x + lin(wvv, wo, bo)

    l2 = ln(x1, ln2_g, ln2_b)
    h = jax.nn.gelu(lin(l2, w1, b1), approximate=False)
    return x1 + lin(h, w2, b2)


# ---------------------------------- main ---------------------------------------

if __name__ == "__main__":
    B, T, D, H = 2, 8, 32, 4       # batch, n_ctx, n_state, n_head
    n_mlp = 4 * D

    key = jax.random.PRNGKey(0)
    ks = jax.random.split(key, 24)

    def w(k, shape, s=0.05):
        return (s * jax.random.normal(k, shape)).astype(jnp.float32)

    x = jax.random.normal(ks[0], (B, T, D), dtype=jnp.float32)

    params = (
        (1.0 + 0.1 * jax.random.normal(ks[1], (1, D))).astype(jnp.float32),   # attn_ln gamma
        w(ks[2], (1, D), 0.02),                                               # attn_ln beta
        w(ks[3], (D, D)), w(ks[4], (1, D), 0.02),                             # Wq, bq
        w(ks[5], (D, D)),                                                     # Wk (no bias)
        w(ks[6], (D, D)), w(ks[7], (1, D), 0.02),                             # Wv, bv
        w(ks[8], (D, D)), w(ks[9], (1, D), 0.02),                             # Wo, bo
        (1.0 + 0.1 * jax.random.normal(ks[10], (1, D))).astype(jnp.float32),  # mlp_ln gamma
        w(ks[11], (1, D), 0.02),                                              # mlp_ln beta
        w(ks[12], (n_mlp, D)), w(ks[13], (1, n_mlp), 0.02),                   # W1, b1
        w(ks[14], (D, n_mlp)), w(ks[15], (1, D), 0.02),                       # W2, b2
    )

    # Case 1: T < one tile -> exercises padding + masked partial kv tile.
    out = jax.block_until_ready(residual_attention_block(x, params, H))
    ref = jax.block_until_ready(reference(x, params, H))
    assert out.shape == (B, T, D) and out.dtype == jnp.float32
    # bf16 MXU operands + bf16 softmax exp vs an all-f32 reference.
    err = jnp.max(jnp.abs(out - ref))
    assert jnp.allclose(out, ref, rtol=1e-2, atol=1e-2), f"max abs err = {err}"

    # Case 2: multi-tile grid -> exercises the fori_loop over full kv tiles, the
    # masked tail tile, and multiple query tiles.
    T2 = 40
    x2 = jax.random.normal(ks[16], (B, T2, D), dtype=jnp.float32)
    out2 = jax.block_until_ready(
        residual_attention_block(x2, params, H, tq=16, tkv=16))
    ref2 = jax.block_until_ready(reference(x2, params, H))
    assert out2.shape == (B, T2, D)
    err2 = jnp.max(jnp.abs(out2 - ref2))
    assert jnp.allclose(out2, ref2, rtol=1e-2, atol=1e-2), f"max abs err = {err2}"

    print("KERNEL_OK")
</pallas_src>

<mosaic_0001>
module attributes {stable_mosaic.version = 11 : i64} {
  func.func @_ln_qkv_kernel(%arg0: i32, %arg1: i32, %arg2: memref<1x16x32xf32, #tpu.memory_space<vmem>>, %arg3: memref<1x32xf32, #tpu.memory_space<vmem>>, %arg4: memref<1x32xf32, #tpu.memory_space<vmem>>, %arg5: memref<32x32xbf16, #tpu.memory_space<vmem>>, %arg6: memref<1x32xf32, #tpu.memory_space<vmem>>, %arg7: memref<32x32xbf16, #tpu.memory_space<vmem>>, %arg8: memref<32x32xbf16, #tpu.memory_space<vmem>>, %arg9: memref<1x32xf32, #tpu.memory_space<vmem>>, %arg10: memref<1x4x16x8xbf16, #tpu.memory_space<vmem>>, %arg11: memref<1x4x16x8xbf16, #tpu.memory_space<vmem>>, %arg12: memref<1x4x16x8xbf16, #tpu.memory_space<vmem>>) attributes {dimension_semantics = [#tpu.dimension_semantics<parallel>, #tpu.dimension_semantics<parallel>], iteration_bounds = array<i64: 2, 1>, scalar_prefetch = 0 : i64, scratch_operands = 0 : i64, tpu.core_type = #tpu.core_type<tc>, window_params = [{transform_indices = @transform_0, window_bounds = array<i64: 1, 16, 32>}, {pipeline_mode = #tpu.pipeline_mode<synchronous>, transform_indices = @transform_1, window_bounds = array<i64: 1, 32>}, {pipeline_mode = #tpu.pipeline_mode<synchronous>, transform_indices = @transform_2, window_bounds = array<i64: 1, 32>}, {pipeline_mode = #tpu.pipeline_mode<synchronous>, transform_indices = @transform_3, window_bounds = array<i64: 32, 32>}, {pipeline_mode = #tpu.pipeline_mode<synchronous>, transform_indices = @transform_4, window_bounds = array<i64: 1, 32>}, {pipeline_mode = #tpu.pipeline_mode<synchronous>, transform_indices = @transform_5, window_bounds = array<i64: 32, 32>}, {pipeline_mode = #tpu.pipeline_mode<synchronous>, transform_indices = @transform_6, window_bounds = array<i64: 32, 32>}, {pipeline_mode = #tpu.pipeline_mode<synchronous>, transform_indices = @transform_7, window_bounds = array<i64: 1, 32>}, {transform_indices = @transform_8, window_bounds = array<i64: 1, 4, 16, 8>}, {transform_indices = @transform_9, window_bounds = array<i64: 1, 4, 16, 8>}, {transform_indices = @transform_10, window_bounds = array<i64: 1, 4, 16, 8>}]} {
    %c0 = arith.constant 0 : index
    %c0_0 = arith.constant 0 : index
    %c0_1 = arith.constant 0 : index
    %0 = vector.load %arg2[%c0, %c0_0, %c0_1] : memref<1x16x32xf32, #tpu.memory_space<vmem>>, vector<1x16x32xf32>
    %1 = vector.shape_cast %0 : vector<1x16x32xf32> to vector<16x32xf32>
    %c0_2 = arith.constant 0 : index
    %c0_3 = arith.constant 0 : index
    %2 = vector.load %arg3[%c0_2, %c0_3] : memref<1x32xf32, #tpu.memory_space<vmem>>, vector<1x32xf32>
    %c0_4 = arith.constant 0 : index
    %c0_5 = arith.constant 0 : index
    %3 = vector.load %arg4[%c0_4, %c0_5] : memref<1x32xf32, #tpu.memory_space<vmem>>, vector<1x32xf32>
    %cst = arith.constant dense<0.000000e+00> : vector<16xf32>
    %4 = vector.multi_reduction <add>, %1, %cst [1] : vector<16x32xf32> to vector<16xf32>
    %5 = vector.shape_cast %4 : vector<16xf32> to vector<16x1xf32>
    %cst_6 = arith.constant 3.200000e+01 : f32
    %6 = vector.broadcast %cst_6 : f32 to vector<16x1xf32>
    %7 = arith.divf %5, %6 : vector<16x1xf32>
    %8 = vector.broadcast %7 : vector<16x1xf32> to vector<16x32xf32>
    %9 = arith.subf %1, %8 : vector<16x32xf32>
    %10 = arith.mulf %9, %9 : vector<16x32xf32>
    %cst_7 = arith.constant dense<0.000000e+00> : vector<16xf32>
    %11 = vector.multi_reduction <add>, %10, %cst_7 [1] : vector<16x32xf32> to vector<16xf32>
    %12 = vector.shape_cast %11 : vector<16xf32> to vector<16x1xf32>
    %cst_8 = arith.constant 3.200000e+01 : f32
    %13 = vector.broadcast %cst_8 : f32 to vector<16x1xf32>
    %14 = arith.divf %12, %13 : vector<16x1xf32>
    %cst_9 = arith.constant 9.99999974E-6 : f32
    %15 = vector.broadcast %cst_9 : f32 to vector<16x1xf32>
    %16 = arith.addf %14, %15 : vector<16x1xf32>
    %17 = math.rsqrt %16 : vector<16x1xf32>
    %18 = vector.broadcast %17 : vector<16x1xf32> to vector<16x32xf32>
    %19 = arith.mulf %9, %18 : vector<16x32xf32>
    %20 = vector.broadcast %2 : vector<1x32xf32> to vector<16x32xf32>
    %21 = arith.mulf %19, %20 : vector<16x32xf32>
    %22 = vector.broadcast %3 : vector<1x32xf32> to vector<16x32xf32>
    %23 = arith.addf %21, %22 : vector<16x32xf32>
    %24 = arith.truncf %23 : vector<16x32xf32> to vector<16x32xbf16>
    %c0_10 = arith.constant 0 : index
    %c0_11 = arith.constant 0 : index
    %25 = vector.load %arg5[%c0_10, %c0_11] : memref<32x32xbf16, #tpu.memory_space<vmem>>, vector<32x32xbf16>
    %cst_12 = arith.constant dense<0.000000e+00> : vector<16x32xf32>
    %26 = tpu.matmul %24, %25, %cst_12 {dimension_numbers = #tpu.dot_dimension_numbers<[1], [0], [0], [1], [0, 0, 1, 1], [], []>} : vector<16x32xbf16>, vector<32x32xbf16>, vector<16x32xf32> -> vector<16x32xf32>
    %c0_13 = arith.constant 0 : index
    %c0_14 = arith.constant 0 : index
    %27 = vector.load %arg6[%c0_13, %c0_14] : memref<1x32xf32, #tpu.memory_space<vmem>>, vector<1x32xf32>
    %28 = vector.broadcast %27 : vector<1x32xf32> to vector<16x32xf32>
    %29 = arith.addf %26, %28 : vector<16x32xf32>
    %c0_15 = arith.constant 0 : index
    %c0_16 = arith.constant 0 : index
    %30 = vector.load %arg7[%c0_15, %c0_16] : memref<32x32xbf16, #tpu.memory_space<vmem>>, vector<32x32xbf16>
    %cst_17 = arith.constant dense<0.000000e+00> : vector<16x32xf32>
    %31 = tpu.matmul %24, %30, %cst_17 {dimension_numbers = #tpu.dot_dimension_numbers<[1], [0], [0], [1], [0, 0, 1, 1], [], []>} : vector<16x32xbf16>, vector<32x32xbf16>, vector<16x32xf32> -> vector<16x32xf32>
    %c0_18 = arith.constant 0 : index
    %c0_19 = arith.constant 0 : index
    %32 = vector.load %arg8[%c0_18, %c0_19] : memref<32x32xbf16, #tpu.memory_space<vmem>>, vector<32x32xbf16>
    %cst_20 = arith.constant dense<0.000000e+00> : vector<16x32xf32>
    %33 = tpu.matmul %24, %32, %cst_20 {dimension_numbers = #tpu.dot_dimension_numbers<[1], [0], [0], [1], [0, 0, 1, 1], [], []>} : vector<16x32xbf16>, vector<32x32xbf16>, vector<16x32xf32> -> vector<16x32xf32>
    %c0_21 = arith.constant 0 : index
    %c0_22 = arith.constant 0 : index
    %34 = vector.load %arg9[%c0_21, %c0_22] : memref<1x32xf32, #tpu.memory_space<vmem>>, vector<1x32xf32>
    %35 = vector.broadcast %34 : vector<1x32xf32> to vector<16x32xf32>
    %36 = arith.addf %33, %35 : vector<16x32xf32>
    %37 = arith.truncf %29 : vector<16x32xf32> to vector<16x32xbf16>
    %38 = vector.shape_cast %37 : vector<16x32xbf16> to vector<16x4x8xbf16>
    %39 = tpu.transpose %38, [1, 0, 2] : vector<16x4x8xbf16> -> vector<4x16x8xbf16>
    %c0_23 = arith.constant 0 : index
    %c0_24 = arith.constant 0 : index
    %c0_25 = arith.constant 0 : index
    %c0_26 = arith.constant 0 : index
    %40 = vector.load %arg10[%c0_23, %c0_24, %c0_25, %c0_26] : memref<1x4x16x8xbf16, #tpu.memory_space<vmem>>, vector<1x4x16x8xbf16>
    %41 = vector.shape_cast %40 : vector<1x4x16x8xbf16> to vector<4x16x8xbf16>
    %42 = vector.shape_cast %39 : vector<4x16x8xbf16> to vector<1x4x16x8xbf16>
    tpu.vector_store %arg10[%c0_23, %c0_24, %c0_25, %c0_26], %42 {strides = array<i32>} : memref<1x4x16x8xbf16, #tpu.memory_space<vmem>>, vector<1x4x16x8xbf16>,
    %43 = arith.truncf %31 : vector<16x32xf32> to vector<16x32xbf16>
    %44 = vector.shape_cast %43 : vector<16x32xbf16> to vector<16x4x8xbf16>
    %45 = tpu.transpose %44, [1, 0, 2] : vector<16x4x8xbf16> -> vector<4x16x8xbf16>
    %c0_27 = arith.constant 0 : index
    %c0_28 = arith.constant 0 : index
    %c0_29 = arith.constant 0 : index
    %c0_30 = arith.constant 0 : index
    %46 = vector.load %arg11[%c0_27, %c0_28, %c0_29, %c0_30] : memref<1x4x16x8xbf16, #tpu.memory_space<vmem>>, vector<1x4x16x8xbf16>
    %47 = vector.shape_cast %46 : vector<1x4x16x8xbf16> to vector<4x16x8xbf16>
    %48 = vector.shape_cast %45 : vector<4x16x8xbf16> to vector<1x4x16x8xbf16>
    tpu.vector_store %arg11[%c0_27, %c0_28, %c0_29, %c0_30], %48 {strides = array<i32>} : memref<1x4x16x8xbf16, #tpu.memory_space<vmem>>, vector<1x4x16x8xbf16>,
    %49 = arith.truncf %36 : vector<16x32xf32> to vector<16x32xbf16>
    %50 = vector.shape_cast %49 : vector<16x32xbf16> to vector<16x4x8xbf16>
    %51 = tpu.transpose %50, [1, 0, 2] : vector<16x4x8xbf16> -> vector<4x16x8xbf16>
    %c0_31 = arith.constant 0 : index
    %c0_32 = arith.constant 0 : index
    %c0_33 = arith.constant 0 : index
    %c0_34 = arith.constant 0 : index
    %52 = vector.load %arg12[%c0_31, %c0_32, %c0_33, %c0_34] : memref<1x4x16x8xbf16, #tpu.memory_space<vmem>>, vector<1x4x16x8xbf16>
    %53 = vector.shape_cast %52 : vector<1x4x16x8xbf16> to vector<4x16x8xbf16>
    %54 = vector.shape_cast %51 : vector<4x16x8xbf16> to vector<1x4x16x8xbf16>
    tpu.vector_store %arg12[%c0_31, %c0_32, %c0_33, %c0_34], %54 {strides = array<i32>} : memref<1x4x16x8xbf16, #tpu.memory_space<vmem>>, vector<1x4x16x8xbf16>,
    return
  }
  func.func @transform_0(%arg0: i32, %arg1: i32) -> (i32, i32, i32) {
    %c0_i32 = arith.constant 0 : i32
    %c0_i32_0 = arith.constant 0 : i32
    return %arg0, %arg1, %c0_i32 : i32, i32, i32
  }
  func.func @transform_1(%arg0: i32, %arg1: i32) -> (i32, i32) {
    %c0_i32 = arith.constant 0 : i32
    %c0_i32_0 = arith.constant 0 : i32
    %c0_i32_1 = arith.constant 0 : i32
    return %c0_i32, %c0_i32_0 : i32, i32
  }
  func.func @transform_2(%arg0: i32, %arg1: i32) -> (i32, i32) {
    %c0_i32 = arith.constant 0 : i32
    %c0_i32_0 = arith.constant 0 : i32
    %c0_i32_1 = arith.constant 0 : i32
    return %c0_i32, %c0_i32_0 : i32, i32
  }
  func.func @transform_3(%arg0: i32, %arg1: i32) -> (i32, i32) {
    %c0_i32 = arith.constant 0 : i32
    %c0_i32_0 = arith.constant 0 : i32
    %c0_i32_1 = arith.constant 0 : i32
    return %c0_i32, %c0_i32_0 : i32, i32
  }
  func.func @transform_4(%arg0: i32, %arg1: i32) -> (i32, i32) {
    %c0_i32 = arith.constant 0 : i32
    %c0_i32_0 = arith.constant 0 : i32
    %c0_i32_1 = arith.constant 0 : i32
    return %c0_i32, %c0_i32_0 : i32, i32
  }
  func.func @transform_5(%arg0: i32, %arg1: i32) -> (i32, i32) {
    %c0_i32 = arith.constant 0 : i32
    %c0_i32_0 = arith.constant 0 : i32
    %c0_i32_1 = arith.constant 0 : i32
    return %c0_i32, %c0_i32_0 : i32, i32
  }
  func.func @transform_6(%arg0: i32, %arg1: i32) -> (i32, i32) {
    %c0_i32 = arith.constant 0 : i32
    %c0_i32_0 = arith.constant 0 : i32
    %c0_i32_1 = arith.constant 0 : i32
    return %c0_i32, %c0_i32_0 : i32, i32
  }
  func.func @transform_7(%arg0: i32, %arg1: i32) -> (i32, i32) {
    %c0_i32 = arith.constant 0 : i32
    %c0_i32_0 = arith.constant 0 : i32
    %c0_i32_1 = arith.constant 0 : i32
    return %c0_i32, %c0_i32_0 : i32, i32
  }
  func.func @transform_8(%arg0: i32, %arg1: i32) -> (i32, i32, i32, i32) {
    %c0_i32 = arith.constant 0 : i32
    %c0_i32_0 = arith.constant 0 : i32
    %c0_i32_1 = arith.constant 0 : i32
    return %arg0, %c0_i32, %arg1, %c0_i32_0 : i32, i32, i32, i32
  }
  func.func @transform_9(%arg0: i32, %arg1: i32) -> (i32, i32, i32, i32) {
    %c0_i32 = arith.constant 0 : i32
    %c0_i32_0 = arith.constant 0 : i32
    %c0_i32_1 = arith.constant 0 : i32
    return %arg0, %c0_i32, %arg1, %c0_i32_0 : i32, i32, i32, i32
  }
  func.func @transform_10(%arg0: i32, %arg1: i32) -> (i32, i32, i32, i32) {
    %c0_i32 = arith.constant 0 : i32
    %c0_i32_0 = arith.constant 0 : i32
    %c0_i32_1 = arith.constant 0 : i32
    return %arg0, %c0_i32, %arg1, %c0_i32_0 : i32, i32, i32, i32
  }
}

</mosaic_0001>

<bundles_post_ra>
// kernel: tpu_custom_call.1
= control target key start
LH: loop header
LB: loop body
LE: loop exit
PB: predicated region body
PF: predicated region fallthrough
CT: control target
= control target key end

     0   :  { %s2677_s0 = inlined_call_operand.hbm [shape: f32[2,16,32], index: 0, kind: input, shape index: {}]   ;;  %s2678_s1 = inlined_call_operand.vmem [shape: f32[1,32], index: 1, kind: input, shape index: {}]   ;;  %s2679_s2 = inlined_call_operand.vmem [shape: f32[1,32], index: 2, kind: input, shape index: {}]   ;;  %s2680_s3 = inlined_call_operand.hbm [shape: bf16[32,32], index: 3, kind: input, shape index: {}]   ;;  %s2681_s4 = inlined_call_operand.vmem [shape: f32[1,32], index: 4, kind: input, shape index: {}]   ;;  %s2682_s5 = inlined_call_operand.hbm [shape: bf16[32,32], index: 5, kind: input, shape index: {}]   ;;  %s2683_s6 = inlined_call_operand.hbm [shape: bf16[32,32], index: 6, kind: input, shape index: {}]   ;;  %s2684_s7 = inlined_call_operand.vmem [shape: f32[1,32], index: 7, kind: input, shape index: {}]   ;;  %s2685_s8 = inlined_call_operand.vmem [shape: bf16[2,4,16,8], index: 8, kind: output, shape index: {0}]   ;;  %s2686_s9 = inlined_call_operand.vmem [shape: bf16[2,4,16,8], index: 9, kind: output, shape index: {1}]   ;;  %s2687_s10 = inlined_call_operand.vmem [shape: bf16[2,4,16,8], index: 10, kind: output, shape index: {2}]  }
   0x1   :  { %2691 = sst [smem:[#allocation12_spill]] %s2677_s0 }
   0x2   :  { %2692 = sst [smem:[#allocation13_spill]] %s2680_s3 }
   0x3   :  { %2693 = sst [smem:[#allocation14_spill]] %s2682_s5 }
   0x4   :  { %16 = vsyncpa [#allocation3], 0 }
   0x5   :  { %18 = vsyncpa [#allocation3 + $0x1], 0 }
   0x6   :  { %19 = vsyncpa [#allocation5], 0 }
   0x7   :  { %20 = vsyncpa [#allocation8], 0  ;;  %s2322_s13 = smov 0   ;;  %s2324_s14 = smov 0  }
   0x8   :  { %s2326_s15 = smov 0   ;;  %s2328_s16 = smov 0  }
   0x9   :  { %s2330_s17 = smov 0   ;;  %s2332_s18 = smov 0  }
   0xa LB: > { %s1868_s19 = sadd.s32 4294967295, %s2249_s18   ;;  %p60_p0 = scmp.ne.s32.totalorder %s2233_s14, %s2229_s13  ;;  %s2249_s18 = sphi %s2332_s18, %s26_s18   ;;  %s2245_s17 = sphi %s2330_s17, %s2708_s17   ;;  %s2241_s16 = sphi %s2328_s16, %s2707_s16   ;;  %s2237_s15 = sphi %s2326_s15, %s2706_s15   ;;  %s2233_s14 = sphi %s2324_s14, %s2705_s14   ;;  %s2229_s13 = sphi %s2322_s13, %s2704_s13  }
   0xb   : > { %p2352_p1 = scmp.eq.s32.totalorder %s1868_s19, 0  ;;  %p1870_p2 = scmp.ge.s32.totalorder %s2249_s18, 1 }
   0xc   : > { %p302_p3 = scmp.lt.s32.totalorder %s2249_s18, 3  ;;  %s2251_s23 = smov [#allocation4]  }
   0xd   : > { %s2694_s20 = scalar_select %p2352_p1, 1, 0 }
   0xe   : > { %p2360_p4 = por %p2352_p1, %p60_p0  ;;  %p2364_p5 = pnand %p1870_p2, %p302_p3 }
   0xf   : > { %s320_s24 = sshll.u32 %s2251_s23, 4  ;;  %s2252_s26 = smov [#allocation6]   ;;  %s321_s24 = int_to_ptr.vmem [resolvable:$true] %s320_s24 }
  0x10   : > { %s2695_s21 = scalar_select %p2360_p4, 1, 0 }
  0x11   : > { %p1991_p6 = pneg %p2364_p5  ;;  %s336_s27 = sshll.u32 %s2252_s26, 4  ;;  %s337_s27 = int_to_ptr.vmem [resolvable:$true] %s336_s27 }
  0x12   : > { %s2253_s28 = smov [#allocation7]   ;;  %s2096_s30 = scalar_lea.vmem %s321_s24, 256 }
  0x13   : > { %p2372_p7 = pnand %p1991_p6, %p2352_p1  ;;  %s349_s29 = sshll.u32 %s2253_s28, 4  ;;  %s350_s29 = int_to_ptr.vmem [resolvable:$true] %s349_s29 }
  0x14   : > { %p2097_p9 = scmp.ne.s32.totalorder %s321_s24, %s2096_s30  ;;  %p2104_p12 = scmp.lt.s32.totalorder %s321_s24, %s321_s24 }
  0x15   : > { %p2087_p8 = pneg %p2372_p7  ;;  %p2105_p13 = scmp.lt.s32.totalorder %s2096_s30, %s2096_s30 }
  0x17   : > { %p2099_p10 = pnand %p2097_p9, %p2087_p8  ;;  %p2106_p0 = por %p2105_p13, %p2104_p12 }
  0x19   : > { %p2100_p11 = pneg %p2099_p10 }
  0x1b   : > { %p2107_p2 = pnand %p2106_p0, %p2100_p11 }
  0x1d   : > { %2110 = shalt.err (!%p2107_p2)
}
  0x1e   : > { %s2254_s11 = smov 64   ;;  %s2255_s12 = smov 4  }
  0x1f   : > { %s2698_s3 = sld [smem:[#allocation13_spill]]  ;;  %s2122_s23 = scalar_lea.vmem %s337_s27, 256 }
  0x20   : > { %p2123_p3 = scmp.ne.s32.totalorder %s337_s27, %s2122_s23  ;;  %p2130_p10 = scmp.lt.s32.totalorder %s337_s27, %s337_s27 }
  0x21   : > { %p2131_p1 = scmp.lt.s32.totalorder %s2122_s23, %s2122_s23 }
  0x22   : > { %p2125_p6 = pnand %p2123_p3, %p2087_p8 }
  0x23   : > { %p2132_p12 = por %p2131_p1, %p2130_p10 }
  0x24   : > { %p2126_p9 = pneg %p2125_p6 }
  0x25   : > { %1994 = dma.hbm_to_vmem [thread:$0]  (!%p2372_p7), %s2698_s3, 256, %s321_s24, [#allocation5], %s2254_s11, %s2254_s11, %s2255_s12  }
  0x26   : > { %p2133_p11 = pnand %p2132_p12, %p2126_p9 }
  0x28   : > { %2136 = shalt.err (!%p2133_p11)
}
  0x29   : > { %s2699_s5 = sld [smem:[#allocation14_spill]]  ;;  %s2148_s24 = scalar_lea.vmem %s350_s29, 256 }
  0x2a   : > { %p2149_p13 = scmp.ne.s32.totalorder %s350_s29, %s2148_s24  ;;  %p2156_p3 = scmp.lt.s32.totalorder %s350_s29, %s350_s29 }
  0x2b   : > { %p2157_p6 = scmp.lt.s32.totalorder %s2148_s24, %s2148_s24 }
  0x2c   : > { %p2151_p0 = pnand %p2149_p13, %p2087_p8 }
  0x2d   : > { %p2158_p4 = por %p2157_p6, %p2156_p3 }
  0x2e   : > { %p2152_p2 = pneg %p2151_p0 }
  0x2f   : > { %1997 = dma.hbm_to_vmem [thread:$0]  (!%p2372_p7), %s2699_s5, 256, %s337_s27, [#allocation5], %s2254_s11, %s2254_s11, %s2255_s12  }
  0x30   : > { %p2159_p1 = pnand %p2158_p4, %p2152_p2 }
  0x32   : > { %2162 = shalt.err (!%p2159_p1)
}
  0x33   : > { %2000 = dma.hbm_to_vmem [thread:$0]  (!%p2372_p7), %s2683_s6, 256, %s350_s29, [#allocation8], %s2254_s11, %s2254_s11, %s2255_s12  }
  0x34   : > { %s47_s27 = sadd.s32 1, %s2237_s15  ;;  %s38_s19 = sadd.s32 1, %s2245_s17 }
  0x35   : > { %p54_p4 = scmp.ne.s32.totalorder %s2237_s15, %s2233_s14  ;;  %p40_p8 = scmp.ge.s32.totalorder %s38_s19, 2 }
  0x36   : > { %p55_p9 = scmp.eq.s32.totalorder %s2249_s18, 0  ;;  %p2008_p10 = scmp.lt.s32.totalorder %s2249_s18, 2 }
  0x37   : > { %s366_s25 = sand.u32 1, %s2237_s15   ;;  %s2710_s19 = smov (%p40_p8, %s38_s19), 0 }
  0x38   : > { %p56_p12 = por %p55_p9, %p54_p4  ;;  %s42_s23 = ssub.s32 %s2245_s17, %s2710_s19 }
  0x39   : > { %s1875_s26 = sshll.u32 %s366_s25, 4  ;;  %p45_p11 = scmp.eq.s32.totalorder %s42_s23, 0 }
  0x3a   : > { %s1940_s28 = sshll.u32 %s2245_s17, 8  ;;  %s370_s24 = scalar_lea.vmem [#allocation2], %s1875_s26 }
  0x3b   : > { %s379_s30 = sshll.u32 %s370_s24, 4  ;;  %s2700_s0 = sld [smem:[#allocation12_spill]]  ;;  %s380_s30 = int_to_ptr.vmem [resolvable:$true] %s379_s30 }
  0x3c   : > { %s2415_s29 = scalar_select %p45_p11, %s2237_s15, %s47_s27  }
  0x3d   : > { %p2422_p7 = pnand %p2008_p10, %p56_p12  ;;  %s367_s5 = scalar_lea.sflag [#allocation3], %s366_s25 }
  0x3e   : > { %s2176_s23 = scalar_lea.vmem %s380_s30, 256  ;;  %s2256_s27 = smov [#allocation2]  }
  0x3f   : > { %p2165_p13 = pneg %p2422_p7  ;;  %p2177_p0 = scmp.ne.s32.totalorder %s380_s30, %s2176_s23 }
  0x40   : > { %s2181_s26 = sshll.u32 %s2256_s27, 4  ;;  %s2182_s26 = int_to_ptr.vmem [resolvable:$false] %s2181_s26 }
  0x41   : > { %s378_s13 = scalar_lea.hbm %s2700_s0, %s1940_s28  ;;  %p2179_p2 = pnand %p2177_p0, %p2165_p13 }
  0x42   : > { %s2183_s24 = scalar_lea.vmem %s2182_s26, 512  ;;  %p2184_p6 = scmp.lt.s32.totalorder %s380_s30, %s2182_s26 }
  0x43   : > { %p2180_p3 = pneg %p2179_p2  ;;  %p2185_p1 = scmp.lt.s32.totalorder %s2183_s24, %s2176_s23 }
  0x45   : > { %p2186_p4 = por %p2185_p1, %p2184_p6 }
  0x47   : > { %p2187_p8 = pnand %p2186_p4, %p2180_p3 }
  0x49   : > { %2190 = shalt.err (!%p2187_p8)
}
  0x4a   : > { %s2257_s28 = smov 128   ;;  %s2258_s11 = smov 8  }
  0x4b   : > { %2004 = dma.hbm_to_vmem [thread:$0]  (!%p2422_p7), %s378_s13, 256, %s380_s30, %s367_s5, %s2257_s28, %s2257_s28, %s2258_s11  }
  0x4c   : > { %391 = sbr.rel (%p2364_p5) target bundleno = 789 (0x315), region = 52  ;;  %s393_s25 = sand.u32 (!%p2364_p5), 1, %s2233_s14  }
  0x4d   : > { %s1879_s12 = sshll.u32 (!%p2364_p5), %s393_s25, 4  ;;  %s394_s27 = scalar_lea.sflag (!%p2364_p5), [#allocation3], %s393_s25 }
  0x4e   : > { %s397_s0 = scalar_lea.vmem (!%p2364_p5), [#allocation2], %s1879_s12  ;;  %p2702_p9 = scmp.ne.s32.totalorder (!%p2364_p5), %s2695_s21, 0 }
  0x51   : > { %2216 = dma.done.wait (%p2702_p9), %s394_s27, 256  }
  0x52   : > { %2218 = vsyncadd (%p2702_p9), %s394_s27, 4294967040  ;;  %p2703_p10 = scmp.ne.s32.totalorder %s2694_s20, 0 }
  0x54   : > { %2220 = dma.done.wait (%p2703_p10), [#allocation5], 512  }
  0x55   : > { %2222 = vsyncadd (%p2703_p10), [#allocation5], 4294966784 }
  0x56   : > { %2224 = dma.done.wait (%p2703_p10), [#allocation8], 256  }
  0x57   : > { %2226 = vsyncadd (%p2703_p10), [#allocation8], 4294967040  ;;  %vm504_vm0 = vcmask 261120   ;;  %v500_v0 = vld [vmem:[%s397_s0] sm:$0xff]  ;;  %v501_v1 = vld [vmem:[%s397_s0 + $0x8] sm:$0xff]  ;;  %v2259_v16 = vmov 0.0   ;;  %v771_v61 = vlaneseq }
  0x58   : > { %v505_v2 = vsel %vm504_vm0, %v500_v0, 0.0  ;;  %v508_v3 = vsel %vm504_vm0, %v501_v1, 0.0  ;;  %v2075_v14 = vld [vmem:[#allocation4 + $0x8] sm:$0xff]   ;;  %v2076_v15 = vld [vmem:[#allocation6 + $0x8] sm:$0xff]   ;;  %1953 = vmatprep.subr.bf16.mxu0 %v2259_v16  ;;  %1961 = vmatprep.subr.bf16.mxu1 %v2259_v16  ;;  %v2077_v17 = vld [vmem:[#allocation4] sm:$0xff]   ;;  %vm2260_vm1 = vmmov 0  }
  0x59   : > { %506 = vadd.xlane.f32.xlu0 %v505_v2  ;;  %1954 = vmatpush3.bf16.msra.mxu0 %v2075_v14  ;;  %v2078_v18 = vld [vmem:[#allocation6] sm:$0xff]   ;;  %v1889_v27 = vld [vmem:[%s2678_s1] ss:$0 sm:$0xff]  ;;  %v2079_v35 = vld [vmem:[#allocation7 + $0x8] sm:$0xff]   ;;  %s2261_s30 = smov 112   ;;  %s2262_s13 = smov 120  }
  0x5a   : > { %1962 = vmatpush3.bf16.msra.mxu1 %v2076_v15  ;;  %1955 = vmatprep.subr.bf16.mxu0 %v2259_v16  ;;  %v1890_v31 = vld [vmem:[%s2679_s2] ss:$0 sm:$0xff]  ;;  %s2263_s24 = smov 104   ;;  %v2264_v59 = vmov 1983009808   ;;  %v2266_v2 = vmov 0  }
  0x5b   : > { %1963 = vmatprep.subr.bf16.mxu1 %v2259_v16  ;;  %1957 = vmatprep.mubr.msk.bf16.mxu0 %vm2260_vm1, %v2259_v16  ;;  %v2080_v37 = vld [vmem:[#allocation7] sm:$0xff]   ;;  %v769_v60 = vunpack.c.l.s4 %v2264_v59  ;;  %v2265_v62 = vmov 1934713408   ;;  %p470_p5 = scmp.lt.s32.totalorder %s2241_s16, 1  ;;  %vm1035_vm2 = vcmask 60416  }
  0x5c   : > { %1965 = vmatprep.mubr.msk.bf16.mxu1 %vm2260_vm1, %v2259_v16  ;;  %v1891_v42 = vld [vmem:[%s2681_s4] ss:$0 sm:$0xff]  ;;  %v800_v63 = vunpack.c.l.s4 %v2265_v62 }
  0x5d   : > { %509 = vadd.xlane.f32.xlu0 %v508_v3  ;;  %1956 = vmatpush3.bf16.msra.mxu0 %v2077_v17  ;;  %v1898_v52 = vld [vmem:[%s2684_s7] ss:$0 sm:$0xff]  ;;  %v2472_v3 = vpack.i.b16 %v2266_v2, %v2266_v2  ;;  %s2712_s16 = smov (!%p470_p5, %s2241_s16), 1 }
  0x5e   : > { %1964 = vmatpush3.bf16.msra.mxu1 %v2078_v18  ;;  %1969 = vmatprep.subr.bf16.mxu0 %v2259_v16  ;;  %s2554_s28 = sshll.u32 %s2712_s16, 5 }
  0x5f   : > { %s487_s25 = scalar_lea.vmem %s2686_s9, %s2554_s28  ;;  %s477_s0 = scalar_lea.vmem %s2685_s8, %s2554_s28 }
  0x60   : > { %s497_s20 = scalar_lea.vmem %s2687_s10, %s2554_s28 }
  0xe2   : > { %v507_v4 = vpop.xlane.xlu0 %506 }
  0xe3   : > { %v512_v5 = vmul.f32 0.03125, %v507_v4 }
  0xe5   : > { %v514_v6 = vsub.f32 %v500_v0, %v512_v5  ;;  %v770_v0 = vunpack.c.0.s8 %v769_v60 }
  0xe6   : > { %v510_v7 = vpop.xlane.xlu0 %509 }
  0xe7   : > { %v513_v8 = vmul.f32 0.03125, %v510_v7  ;;  %v516_v9 = vmul.f32 %v514_v6, %v514_v6 }
  0xe9   : > { %v515_v10 = vsub.f32 %v501_v1, %v513_v8  ;;  %v518_v11 = vsel %vm504_vm0, %v516_v9, 0.0  ;;  %v772_v1 = vshrl.u32 %v771_v61, 7 }
  0xea   : > { %519 = vadd.xlane.f32.xlu1 %v518_v11 }
  0xeb   : > { %v517_v12 = vmul.f32 %v515_v10, %v515_v10 }
  0xed   : > { %v521_v13 = vsel %vm504_vm0, %v517_v12, 0.0 }
  0xee   : > { %522 = vadd.xlane.f32.xlu1 %v521_v13 }
 0x173   : > { %v520_v19 = vpop.xlane.xlu1 %519 }
 0x174   : > { %v524_v20 = vmul.f32 0.03125, %v520_v19 }
 0x176   : > { %v526_v21 = vadd.f32 1e-05, %v524_v20 }
 0x177   : > { %v523_v22 = vpop.xlane.xlu1 %522 }
 0x178   : > { %2081 = vrsqrt.f32 %v526_v21  ;;  %v525_v23 = vmul.f32 0.03125, %v523_v22 }
 0x17a   : > { %v527_v24 = vadd.f32 1e-05, %v525_v23 }
 0x17c   : > { %2083 = vrsqrt.f32 %v527_v24 }
 0x185   : > { %v2082_v25 = vpop.eup %2081 }
 0x186   : > { %v530_v26 = vmul.f32 %v2082_v25, %v514_v6  ;;  %v801_v6 = vunpack.c.0.s8 %v800_v63 }
 0x188   : > { %v538_v30 = vmul.f32 %v1889_v27, %v530_v26  ;;  %v2477_v13 = vsub.s32 %v801_v6, %v772_v1 }
 0x189   : > { %v2084_v28 = vpop.eup %2083 }
 0x18a   : > { %v531_v29 = vmul.f32 %v2084_v28, %v515_v10  ;;  %v546_v33 = vadd.f32 %v1890_v31, %v538_v30  ;;  %v2474_v10 = vsub.s32 %v770_v0, %v772_v1 }
 0x18c   : > { %v539_v32 = vmul.f32 %v1889_v27, %v531_v29 }
 0x18e   : > { %v547_v34 = vadd.f32 %v1890_v31, %v539_v32 }
 0x190   : > { %v548_v36 = vpack.c.bf16 %v547_v34, %v546_v33 }
 0x192   : > { %1958 = vmatmul.mubr.msk.bf16.vlgmr.msra.gmra.mxu0 %vm504_vm0, %v548_v36  ;;  %1966 = vmatmul.mubr.msk.bf16.vlgmr.msra.gmra.mxu1 %vm504_vm0, %v548_v36 }
 0x193   : > { %1970 = vmatpush3.bf16.msra.mxu0 %v2079_v35  ;;  %1973 = vmatprep.mubr.msk.bf16.mxu0 %vm2260_vm1, %v2259_v16 }
 0x194   : > { %1971 = vmatprep.subr.bf16.mxu0 %v2259_v16 }
 0x197   : > { %1972 = vmatpush3.bf16.msra.mxu0 %v2080_v37 }
 0x19a   : > { %1974 = vmatmul.mubr.msk.bf16.vlgmr.msra.gmra.mxu0 %vm504_vm0, %v548_v36 }
 0x252   : > { %v609_v38 = vpop.f32.mrf.mxu0  ;;  %v666_v39 = vpop.f32.mrf.mxu1 }
 0x253   : > { %v610_v49 = vadd.f32 %v1891_v42, %v609_v38 }
 0x254   : > { %v1959_v40 = vpop.f32.mrf.mxu0  ;;  %v1967_v41 = vpop.f32.mrf.mxu1 }
 0x256   : > { %v612_v43 = vpop.f32.mrf.mxu0  ;;  %v669_v44 = vpop.f32.mrf.mxu1 }
 0x257   : > { %v613_v45 = vadd.f32 %v1891_v42, %v612_v43  ;;  %v1044_v46 = vpack.c.bf16 %v669_v44, %v666_v39 }
 0x258   : > { %v1960_v47 = vpop.f32.mrf.mxu0  ;;  %v1968_v48 = vpop.f32.mrf.mxu1 }
 0x259   : > { %1048 = vrot.lane.b32.xlu0 %v1044_v46, %s2261_s30  ;;  %1046 = vrot.lane.b32.xlu1 %v1044_v46, %s2262_s13  ;;  %v737_v51 = vpack.c.bf16 %v613_v45, %v610_v49  ;;  %v1056_v8 = vshrl.u32 %v1044_v46, 16 }
 0x25a   : > { %v730_v50 = vpop.f32.mrf.mxu0 }
 0x25b   : > { %v731_v55 = vadd.f32 %v1898_v52, %v730_v50  ;;  %v749_v16 = vshrl.u32 %v737_v51, 16 }
 0x25c   : > { %v1975_v53 = vpop.f32.mrf.mxu0 }
 0x25d   : > { %1050 = vrot.lane.b32.xlu1 %v1044_v46, %s2263_s24  ;;  %739 = vrot.lane.b32.xlu0 %v737_v51, %s2262_s13 }
 0x25e   : > { %v733_v54 = vpop.f32.mrf.mxu0 }
 0x25f   : > { %v734_v56 = vadd.f32 %v1898_v52, %v733_v54 }
 0x260   : > { %v1976_v57 = vpop.f32.mrf.mxu0 }
 0x261   : > { %v2467_v58 = vpack.c.bf16 %v734_v56, %v731_v55  ;;  %741 = vrot.lane.b32.xlu1 %v737_v51, %s2261_s30 }
 0x263   : > { %1346 = vrot.lane.b32.xlu0 %v2467_v58, %s2262_s13  ;;  %v1356_v20 = vshrl.u32 %v2467_v58, 16 }
 0x265   : > { %743 = vrot.lane.b32.xlu1 %v737_v51, %s2263_s24 }
 0x267   : > { %1350 = vrot.lane.b32.xlu0 %v2467_v58, %s2263_s24 }
 0x269   : > { %1348 = vrot.lane.b32.xlu1 %v2467_v58, %s2261_s30 }
 0x2cb   : > { %v1049_v4 = vpop.permute.xlu0 %1048  ;;  %v1047_v5 = vpop.permute.xlu1 %1046 }
 0x2cc   : > { %v1054_v7 = vpack.i.b16 %v1047_v5, %v1044_v46  ;;  %v1057_v9 = vshrl.u32 %v1047_v5, 16  ;;  %v1064_v17 = vshrl.u32 %v1049_v4, 16 }
 0x2ce   : > { %v1058_v11 = vpack.i.b16 %v1057_v9, %v1056_v8  ;;  %v1068_v12 = vcombine.high %v1054_v7, %v2472_v3  ;;  %v1075_v21 = vrot.slane %v1054_v7, %v2474_v10 }
 0x2cf   : > { %v1051_v14 = vpop.permute.xlu1 %1050  ;;  %v740_v15 = vpop.permute.xlu0 %739 }
 0x2d0   : > { %v1134_v18 = vcombine.high %v1058_v11, %v2472_v3  ;;  %v1062_v19 = vpack.i.b16 %v1051_v14, %v1049_v4  ;;  %v1065_v22 = vshrl.u32 %v1051_v14, 16  ;;  %v747_v23 = vpack.i.b16 %v740_v15, %v737_v51 }
 0x2d1   : > { %v750_v24 = vshrl.u32 %v740_v15, 16  ;;  %v1082_v25 = vrot.slane %v1068_v12, %v2474_v10  ;;  %v1141_v26 = vrot.slane %v1058_v11, %v2474_v10 }
 0x2d2   : > { %v1083_v27 = vcombine.high %v1062_v19, %v2472_v3  ;;  %v1090_v28 = vrot.slane %v1062_v19, %v2474_v10  ;;  %v1148_v29 = vrot.slane %v1134_v18, %v2474_v10  ;;  %v1066_v30 = vpack.i.b16 %v1065_v22, %v1064_v17 }
 0x2d3   : > { %v751_v31 = vpack.i.b16 %v750_v24, %v749_v16  ;;  %v767_v32 = vcombine.high %v747_v23, %v2472_v3  ;;  %v2488_v33 = vpop.permute.xlu1 %741  ;;  %v2492_v37 = vrot.slane %v747_v23, %v2474_v10 }
 0x2d4   : > { %v1097_v34 = vrot.slane %v1083_v27, %v2474_v10  ;;  %v1098_v35 = vcombine.low %v1075_v21, %v1090_v28  ;;  %v1099_v36 = vcombine.high %v1075_v21, %v1090_v28  ;;  %v1149_v38 = vcombine.high %v1066_v30, %v2472_v3 }
 0x2d5   : > { %v1156_v39 = vrot.slane %v1066_v30, %v2474_v10  ;;  %v2497_v40 = vrot.slane %v767_v32, %v2474_v10  ;;  %v757_v41 = vshrl.u32 %v2488_v33, 16  ;;  %v833_v49 = vcombine.high %v751_v31, %v2472_v3  ;;  %v1347_v4 = vpop.permute.xlu0 %1346 }
 0x2d6   : > { %v1106_v42 = vrot.slane %v1098_v35, %v2477_v13  ;;  %v1113_v43 = vrot.slane %v1099_v36, %v2477_v13  ;;  %v1114_v44 = vcombine.low %v1082_v25, %v1097_v34  ;;  %v1115_v45 = vcombine.high %v1082_v25, %v1097_v34 }
 0x2d7   : > { %v1163_v46 = vrot.slane %v1149_v38, %v2474_v10  ;;  %v1164_v47 = vcombine.low %v1141_v26, %v1156_v39  ;;  %v1165_v48 = vcombine.high %v1141_v26, %v1156_v39  ;;  %v2515_v8 = vrot.slane %v751_v31, %v2474_v10  ;;  %v744_v9 = vpop.permute.xlu1 %743 }
 0x2d8   : > { %v1122_v50 = vrot.slane %v1114_v44, %v2477_v13  ;;  %v1129_v51 = vrot.slane %v1115_v45, %v2477_v13  ;;  %v1200_v52 = vcombine.low %v1106_v42, %v1113_v43  ;;  %v1914_v53 = vcombine.high %v1106_v42, %v1113_v43 }
 0x2d9   : > { %v1172_v54 = vrot.slane %v1164_v47, %v2477_v13  ;;  %v1179_v55 = vrot.slane %v1165_v48, %v2477_v13  ;;  %v1180_v56 = vcombine.low %v1148_v29, %v1163_v46  ;;  %v1181_v57 = vcombine.high %v1148_v29, %v1163_v46 }
 0x2da   : > { %v1207_v59 = vrot.slane %v1200_v52, %v2474_v10  ;;  %v1215_v60 = vrot.slane %v1914_v53, %v2474_v10  ;;  %v1216_v61 = vcombine.low %v1122_v50, %v1129_v51  ;;  %v1915_v62 = vcombine.high %v1122_v50, %v1129_v51 }
 0x2db   : > { %v1188_v63 = vrot.slane %v1180_v56, %v2477_v13  ;;  %v1195_v0 = vrot.slane %v1181_v57, %v2477_v13  ;;  %v1250_v1 = vcombine.low %v1172_v54, %v1179_v55  ;;  %v1916_v2 = vcombine.high %v1172_v54, %v1179_v55 }
 0x2dc   : > { %v1223_v5 = vrot.slane %v1216_v61, %v2474_v10  ;;  %v1231_v6 = vrot.slane %v1915_v62, %v2474_v10  ;;  %v1232_v7 = vcombine.low %v1207_v59, %v1215_v60  ;;  %v2521_v17 = vrot.slane %v833_v49, %v2474_v10 }
 0x2dd   : > { %v1257_v11 = vrot.slane %v1250_v1, %v2474_v10  ;;  %v1265_v12 = vrot.slane %v1916_v2, %v2474_v10  ;;  %v1266_v14 = vcombine.low %v1188_v63, %v1195_v0  ;;  %v1917_v15 = vcombine.high %v1188_v63, %v1195_v0 }
 0x2de   : > { %v1240_v16 = vcombine.low %v1223_v5, %v1231_v6  ;;  %v1354_v18 = vpack.i.b16 %v1347_v4, %v2467_v58  ;;  %v1357_v19 = vshrl.u32 %v1347_v4, 16  ;;  %v755_v24 = vpack.i.b16 %v744_v9, %v2488_v33 }
 0x2df   : > { %v1273_v21 = vrot.slane %v1266_v14, %v2474_v10  ;;  %v1281_v22 = vrot.slane %v1917_v15, %v2474_v10  ;;  %v1282_v23 = vcombine.low %v1257_v11, %v1265_v12  ;;  %v1239_v25 = vrot.slane %v1232_v7, %v2477_v13  ;;  %v1351_v11 = vpop.permute.xlu0 %1350 }
 0x2e0   : > { %v1247_v26 = vrot.slane %v1240_v16, %v2477_v13  ;;  %v2531_v27 = vpack.i.b16 %v1357_v19, %v1356_v20  ;;  %v1368_v28 = vcombine.high %v1354_v18, %v2472_v3  ;;  %v2538_v30 = vrot.slane %v1354_v18, %v2474_v10 }
 0x2e1   : > { %v1290_v29 = vcombine.low %v1273_v21, %v1281_v22  ;;  %v758_v31 = vshrl.u32 %v744_v9, 16  ;;  %v782_v32 = vcombine.high %v755_v24, %v2472_v3  ;;  %v1289_v35 = vrot.slane %v1282_v23, %v2477_v13 }
 0x2e2   : > { %v1248_v33 = vcombine.low %v1239_v25, %v1247_v26  ;;  %v1249_v34 = vcombine.high %v1239_v25, %v1247_v26  ;;  %v2543_v36 = vrot.slane %v1368_v28, %v2474_v10  ;;  %v1434_v20 = vcombine.high %v2531_v27, %v2472_v3 }
 0x2e3   : > { %v1297_v58 = vrot.slane %v1290_v29, %v2477_v13  ;;  %v759_v38 = vpack.i.b16 %v758_v31, %v757_v41  ;;  %v789_v39 = vrot.slane %v755_v24, %v2474_v10  ;;  %v2551_v44 = vrot.slane %v2531_v27, %v2474_v10 }
 0x2e4   : > { %v1303_v42 = vshrl.u32 %v1248_v33, 16  ;;  %v1309_v43 = vshrl.u32 %v1249_v34, 16  ;;  %v796_v45 = vrot.slane %v782_v32, %v2474_v10  ;;  %v1365_v25 = vshrl.u32 %v1351_v11, 16 }
 0x2e5   : > { %v1298_v46 = vcombine.low %v1289_v35, %v1297_v58  ;;  %v1299_v47 = vcombine.high %v1289_v35, %v1297_v58  ;;  %v797_v48 = vcombine.low %v2492_v37, %v789_v39  ;;  %v798_v49 = vcombine.high %v2492_v37, %v789_v39 }
 0x2e6   : > { %v813_v41 = vcombine.low %v2497_v40, %v796_v45  ;;  %v814_v50 = vcombine.high %v2497_v40, %v796_v45  ;;  %v848_v51 = vcombine.high %v759_v38, %v2472_v3  ;;  %v855_v52 = vrot.slane %v759_v38, %v2474_v10 }
 0x2e7   : > { %v1302_v53 = vpack.i.b16 %v1298_v46, %v1248_v33  ;;  %v1304_v54 = vshrl.u32 %v1298_v46, 16  ;;  %v1308_v55 = vpack.i.b16 %v1299_v47, %v1249_v34  ;;  %v1310_v56 = vshrl.u32 %v1299_v47, 16 }
 0x2e8   : > { %v805_v57 = vrot.slane %v797_v48, %v2477_v13  ;;  %v812_v37 = vrot.slane %v798_v49, %v2477_v13  ;;  %v821_v59 = vrot.slane %v813_v41, %v2477_v13  ;;  %v828_v40 = vrot.slane %v814_v50, %v2477_v13 }
 0x2e9   : > { %v1305_v60 = vpack.i.b16 %v1304_v54, %v1303_v42  ;;  %v1311_v61 = vpack.i.b16 %v1310_v56, %v1309_v43  ;;  %v1918_v62 = vcombine.low %v1302_v53, %v1302_v53  ;;  %v1919_v63 = vcombine.high %v1302_v53, %v1302_v53 }
 0x2ea   : > { %v1922_v0 = vcombine.low %v1308_v55, %v1308_v55  ;;  %v1923_v1 = vcombine.high %v1308_v55, %v1308_v55  ;;  %v862_v2 = vrot.slane %v848_v51, %v2474_v10  ;;  %v863_v4 = vcombine.low %v2515_v8, %v855_v52 }
 0x2eb   : > { %v1920_v5 = vcombine.low %v1305_v60, %v1305_v60  ;;  %v1921_v6 = vcombine.high %v1305_v60, %v1305_v60  ;;  %v1924_v7 = vcombine.low %v1311_v61, %v1311_v61  ;;  %v1925_v9 = vcombine.high %v1311_v61, %v1311_v61  ;;  %1336 = vst.msk [vmem:[%s487_s25] sm:$0xf] %vm1035_vm2, %v1918_v62 }
 0x2ec   : > { %1337 = vst.msk [vmem:[%s487_s25 + $0x4] sm:$0xf] %vm1035_vm2, %v1919_v63  ;;  %1340 = vst.msk [vmem:[%s487_s25 + $0x10] sm:$0xf] %vm1035_vm2, %v1922_v0  ;;  %v864_v12 = vcombine.high %v2515_v8, %v855_v52  ;;  %v871_v14 = vrot.slane %v863_v4, %v2477_v13  ;;  %v879_v15 = vcombine.low %v2521_v17, %v862_v2 }
 0x2ed   : > { %1341 = vst.msk [vmem:[%s487_s25 + $0x14] sm:$0xf] %vm1035_vm2, %v1923_v1  ;;  %v880_v16 = vcombine.high %v2521_v17, %v862_v2  ;;  %1338 = vst.msk [vmem:[%s487_s25 + $0x8] sm:$0xf] %vm1035_vm2, %v1920_v5  ;;  %v899_v18 = vcombine.low %v805_v57, %v812_v37  ;;  %v1902_v19 = vcombine.high %v805_v57, %v812_v37  ;;  %v1349_v17 = vpop.permute.xlu1 %1348 }
 0x2ee   : > { %1339 = vst.msk [vmem:[%s487_s25 + $0xc] sm:$0xf] %vm1035_vm2, %v1921_v6  ;;  %1342 = vst.msk [vmem:[%s487_s25 + $0x18] sm:$0xf] %vm1035_vm2, %v1924_v7  ;;  %v915_v21 = vcombine.low %v821_v59, %v828_v40  ;;  %v1903_v22 = vcombine.high %v821_v59, %v828_v40  ;;  %v878_v8 = vrot.slane %v864_v12, %v2477_v13  ;;  %v1364_v42 = vshrl.u32 %v1349_v17, 16 }
 0x2ef   : > { %1343 = vst.msk [vmem:[%s487_s25 + $0x1c] sm:$0xf] %vm1035_vm2, %v1925_v9  ;;  %v887_v23 = vrot.slane %v879_v15, %v2477_v13  ;;  %v894_v24 = vrot.slane %v880_v16, %v2477_v13  ;;  %v906_v26 = vrot.slane %v899_v18, %v2474_v10  ;;  %v914_v28 = vrot.slane %v1902_v19, %v2474_v10 }
 0x2f0   : > { %v922_v29 = vrot.slane %v915_v21, %v2474_v10  ;;  %v930_v31 = vrot.slane %v1903_v22, %v2474_v10  ;;  %v949_v32 = vcombine.low %v871_v14, %v878_v8  ;;  %v1904_v33 = vcombine.high %v871_v14, %v878_v8 }
 0x2f1   : > { %v965_v34 = vcombine.low %v887_v23, %v894_v24  ;;  %v1905_v35 = vcombine.high %v887_v23, %v894_v24  ;;  %v931_v58 = vcombine.low %v906_v26, %v914_v28  ;;  %v1362_v39 = vpack.i.b16 %v1351_v11, %v1349_v17 }
 0x2f2   : > { %v939_v38 = vcombine.low %v922_v29, %v930_v31  ;;  %v956_v43 = vrot.slane %v949_v32, %v2474_v10  ;;  %v964_v45 = vrot.slane %v1904_v33, %v2474_v10  ;;  %v1366_v41 = vpack.i.b16 %v1365_v25, %v1364_v42 }
 0x2f3   : > { %v972_v46 = vrot.slane %v965_v34, %v2474_v10  ;;  %v980_v47 = vrot.slane %v1905_v35, %v2474_v10  ;;  %v938_v48 = vrot.slane %v931_v58, %v2477_v13  ;;  %v1383_v50 = vcombine.high %v1362_v39, %v2472_v3 }
 0x2f4   : > { %v946_v49 = vrot.slane %v939_v38, %v2477_v13  ;;  %v1448_v51 = vrot.slane %v1434_v20, %v2474_v10  ;;  %v981_v52 = vcombine.low %v956_v43, %v964_v45  ;;  %v1390_v54 = vrot.slane %v1362_v39, %v2474_v10 }
 0x2f5   : > { %v989_v53 = vcombine.low %v972_v46, %v980_v47  ;;  %v1397_v57 = vrot.slane %v1383_v50, %v2474_v10  ;;  %v1449_v37 = vcombine.high %v1366_v41, %v2472_v3  ;;  %v1456_v6 = vrot.slane %v1366_v41, %v2474_v10 }
 0x2f6   : > { %v947_v55 = vcombine.low %v938_v48, %v946_v49  ;;  %v948_v56 = vcombine.high %v938_v48, %v946_v49  ;;  %v988_v59 = vrot.slane %v981_v52, %v2477_v13  ;;  %v1398_v60 = vcombine.low %v2538_v30, %v1390_v54 }
 0x2f7   : > { %v996_v40 = vrot.slane %v989_v53, %v2477_v13  ;;  %v1399_v61 = vcombine.high %v2538_v30, %v1390_v54  ;;  %v1414_v62 = vcombine.low %v2543_v36, %v1397_v57  ;;  %v1415_v63 = vcombine.high %v2543_v36, %v1397_v57 }
 0x2f8   : > { %v1002_v27 = vshrl.u32 %v947_v55, 16  ;;  %v1008_v20 = vshrl.u32 %v948_v56, 16  ;;  %v1406_v2 = vrot.slane %v1398_v60, %v2477_v13  ;;  %v1463_v30 = vrot.slane %v1449_v37, %v2474_v10 }
 0x2f9   : > { %v997_v0 = vcombine.low %v988_v59, %v996_v40  ;;  %v998_v1 = vcombine.high %v988_v59, %v996_v40  ;;  %v1413_v3 = vrot.slane %v1399_v61, %v2477_v13  ;;  %v1422_v4 = vrot.slane %v1414_v62, %v2477_v13 }
 0x2fa   : > { %v1429_v5 = vrot.slane %v1415_v63, %v2477_v13  ;;  %v1464_v36 = vcombine.low %v2551_v44, %v1456_v6  ;;  %v1465_v14 = vcombine.high %v2551_v44, %v1456_v6  ;;  %v1480_v15 = vcombine.low %v1448_v51, %v1463_v30 }
 0x2fb   : > { %v1001_v7 = vpack.i.b16 %v997_v0, %v947_v55  ;;  %v1003_v9 = vshrl.u32 %v997_v0, 16  ;;  %v1007_v11 = vpack.i.b16 %v998_v1, %v948_v56  ;;  %v1009_v12 = vshrl.u32 %v998_v1, 16 }
 0x2fc   : > { %v1481_v16 = vcombine.high %v1448_v51, %v1463_v30  ;;  %v1472_v24 = vrot.slane %v1464_v36, %v2477_v13  ;;  %v1479_v25 = vrot.slane %v1465_v14, %v2477_v13  ;;  %v1488_v44 = vrot.slane %v1480_v15, %v2477_v13 }
 0x2fd   : > { %v1004_v18 = vpack.i.b16 %v1003_v9, %v1002_v27  ;;  %v1010_v19 = vpack.i.b16 %v1009_v12, %v1008_v20  ;;  %v1906_v21 = vcombine.low %v1001_v7, %v1001_v7  ;;  %v1907_v22 = vcombine.high %v1001_v7, %v1001_v7 }
 0x2fe   : > { %v1910_v8 = vcombine.low %v1007_v11, %v1007_v11  ;;  %v1911_v23 = vcombine.high %v1007_v11, %v1007_v11  ;;  %v1495_v31 = vrot.slane %v1481_v16, %v2477_v13  ;;  %v1500_v32 = vcombine.low %v1406_v2, %v1413_v3 }
 0x2ff   : > { %v1908_v17 = vcombine.low %v1004_v18, %v1004_v18  ;;  %v1909_v26 = vcombine.high %v1004_v18, %v1004_v18  ;;  %v1912_v28 = vcombine.low %v1010_v19, %v1010_v19  ;;  %v1913_v29 = vcombine.high %v1010_v19, %v1010_v19  ;;  %1036 = vst.msk [vmem:[%s477_s0] sm:$0xf] %vm1035_vm2, %v1906_v21 }
 0x300   : > { %1037 = vst.msk [vmem:[%s477_s0 + $0x4] sm:$0xf] %vm1035_vm2, %v1907_v22  ;;  %1040 = vst.msk [vmem:[%s477_s0 + $0x10] sm:$0xf] %vm1035_vm2, %v1910_v8  ;;  %v1926_v33 = vcombine.high %v1406_v2, %v1413_v3  ;;  %v1516_v34 = vcombine.low %v1422_v4, %v1429_v5  ;;  %v1927_v35 = vcombine.high %v1422_v4, %v1429_v5 }
 0x301   : > { %1041 = vst.msk [vmem:[%s477_s0 + $0x14] sm:$0xf] %vm1035_vm2, %v1911_v23  ;;  %1038 = vst.msk [vmem:[%s477_s0 + $0x8] sm:$0xf] %vm1035_vm2, %v1908_v17  ;;  %v1550_v58 = vcombine.low %v1472_v24, %v1479_v25  ;;  %v1928_v38 = vcombine.high %v1472_v24, %v1479_v25  ;;  %v1507_v39 = vrot.slane %v1500_v32, %v2474_v10 }
 0x302   : > { %1039 = vst.msk [vmem:[%s477_s0 + $0xc] sm:$0xf] %vm1035_vm2, %v1909_v26  ;;  %1042 = vst.msk [vmem:[%s477_s0 + $0x18] sm:$0xf] %vm1035_vm2, %v1912_v28  ;;  %v1515_v42 = vrot.slane %v1926_v33, %v2474_v10  ;;  %v1566_v43 = vcombine.low %v1488_v44, %v1495_v31  ;;  %v1929_v45 = vcombine.high %v1488_v44, %v1495_v31 }
 0x303   : > { %1043 = vst.msk [vmem:[%s477_s0 + $0x1c] sm:$0xf] %vm1035_vm2, %v1913_v29  ;;  %v1523_v46 = vrot.slane %v1516_v34, %v2474_v10  ;;  %v1531_v47 = vrot.slane %v1927_v35, %v2474_v10  ;;  %v1557_v48 = vrot.slane %v1550_v58, %v2474_v10  ;;  %v1565_v49 = vrot.slane %v1928_v38, %v2474_v10 }
 0x304   : > { %v1532_v41 = vcombine.low %v1507_v39, %v1515_v42  ;;  %v1573_v50 = vrot.slane %v1566_v43, %v2474_v10  ;;  %v1581_v51 = vrot.slane %v1929_v45, %v2474_v10 }
 0x305   : > { %v1540_v52 = vcombine.low %v1523_v46, %v1531_v47  ;;  %v1582_v53 = vcombine.low %v1557_v48, %v1565_v49 }
 0x306   : > { %v1590_v54 = vcombine.low %v1573_v50, %v1581_v51  ;;  %v1539_v55 = vrot.slane %v1532_v41, %v2477_v13 }
 0x307   : > { %v1547_v56 = vrot.slane %v1540_v52, %v2477_v13  ;;  %v1589_v57 = vrot.slane %v1582_v53, %v2477_v13 }
 0x308   : > { %v1597_v37 = vrot.slane %v1590_v54, %v2477_v13 }
 0x309   : > { %v1548_v59 = vcombine.low %v1539_v55, %v1547_v56  ;;  %v1549_v40 = vcombine.high %v1539_v55, %v1547_v56 }
 0x30a   : > { %v1598_v60 = vcombine.low %v1589_v57, %v1597_v37  ;;  %v1599_v61 = vcombine.high %v1589_v57, %v1597_v37 }
 0x30b   : > { %v1603_v27 = vshrl.u32 %v1548_v59, 16  ;;  %v1609_v20 = vshrl.u32 %v1549_v40, 16 }
 0x30c   : > { %v1602_v62 = vpack.i.b16 %v1598_v60, %v1548_v59  ;;  %v1604_v10 = vshrl.u32 %v1598_v60, 16  ;;  %v1608_v63 = vpack.i.b16 %v1599_v61, %v1549_v40  ;;  %v1610_v0 = vshrl.u32 %v1599_v61, 16 }
 0x30e   : > { %v1605_v1 = vpack.i.b16 %v1604_v10, %v1603_v27  ;;  %v1611_v2 = vpack.i.b16 %v1610_v0, %v1609_v20  ;;  %v1930_v3 = vcombine.low %v1602_v62, %v1602_v62  ;;  %v1931_v4 = vcombine.high %v1602_v62, %v1602_v62 }
 0x30f   : > { %v1934_v5 = vcombine.low %v1608_v63, %v1608_v63  ;;  %v1935_v13 = vcombine.high %v1608_v63, %v1608_v63 }
 0x310   : > { %v1932_v6 = vcombine.low %v1605_v1, %v1605_v1  ;;  %v1933_v30 = vcombine.high %v1605_v1, %v1605_v1  ;;  %v1936_v7 = vcombine.low %v1611_v2, %v1611_v2  ;;  %v1937_v9 = vcombine.high %v1611_v2, %v1611_v2  ;;  %1636 = vst.msk [vmem:[%s497_s20] sm:$0xf] %vm1035_vm2, %v1930_v3 }
 0x311   : > { %1637 = vst.msk [vmem:[%s497_s20 + $0x4] sm:$0xf] %vm1035_vm2, %v1931_v4  ;;  %1640 = vst.msk [vmem:[%s497_s20 + $0x10] sm:$0xf] %vm1035_vm2, %v1934_v5 }
 0x312   : > { %1641 = vst.msk [vmem:[%s497_s20 + $0x14] sm:$0xf] %vm1035_vm2, %v1935_v13  ;;  %1638 = vst.msk [vmem:[%s497_s20 + $0x8] sm:$0xf] %vm1035_vm2, %v1932_v6 }
 0x313   : > { %1639 = vst.msk [vmem:[%s497_s20 + $0xc] sm:$0xf] %vm1035_vm2, %v1933_v30  ;;  %1642 = vst.msk [vmem:[%s497_s20 + $0x18] sm:$0xf] %vm1035_vm2, %v1936_v7 }
 0x314   : > { %1643 = vst.msk [vmem:[%s497_s20 + $0x1c] sm:$0xf] %vm1035_vm2, %v1937_v9 }
 0x315 PF: > { %s26_s18 = sadd.s32 1, %s2249_s18   ;;  %s2704_s13 = smov %s2233_s14 }
 0x316   : > { %p23_p12 = scmp.ge.s32.totalorder %s26_s18, 4   ;;  %s2705_s14 = smov %s2237_s15 }
 0x317   : > { %s2706_s15 = smov %s2415_s29  ;;  %s2707_s16 = smov %s2245_s17 }
 0x318   : > { %s2708_s17 = smov %s2710_s19  ;;  %25 = sbr.rel (!%p23_p12) target bundleno = 10 (0xa), region = 128 }
 0x31d   :  { %1724 = vsyncpa [#allocation3], 1 }
 0x31e   :  { %1726 = vsyncpa [#allocation3 + $0x1], 1 }
 0x31f   :  { %1727 = vsyncpa [#allocation5], 1 }
 0x320   :  { %1728 = vsyncpa [#allocation8], 1 }

</bundles_post_ra>
